<compile_context>
chip_gen: v7x
topology: tpu7x:2x2x1
jax: 0.10.0
libtpu: 0.0.40
codegen_flags: <defaults>
</compile_context>

<pallas_src>
import jax
import jax.numpy as jnp
from jax.experimental import pallas as pl
from jax.experimental.pallas import tpu as pltpu  # noqa: F401  (TPU backend)

N, CIN, H, W = 2, 3, 16, 16
COUT, K = 8, 3
P = N * H * W            # 512 pixels
KC = K * K * CIN         # 27 taps*channels
EPS = 1e-5


def conv_bn_kernel(pt_ref, wt_ref, b_ref, gamma_ref, beta_ref, out_ref):
    """Fused conv-as-matmul + batchnorm(training) + elementwise combine.

    pt_ref   : (KC, P)   = (27, 512)  im2col patches, transposed (lane-dense)
    wt_ref   : (COUT, KC) = (8, 27)   conv weights, transposed
    b_ref    : (COUT, 1)              conv bias
    gamma_ref: (COUT, 1)              BN scale
    beta_ref : (COUT, 1)              BN shift
    out_ref  : (COUT, P)  = (8, 512)  channel-major flattened output
    """
    # One matmul instead of 9 slice+dot steps; result stays lane-dense (8,512).
    v1 = jnp.dot(wt_ref[...], pt_ref[...],
                 preferred_element_type=jnp.float32) + b_ref[...]

    # BatchNorm2d training mode: biased batch stats per channel (axis=1 here).
    # Single-pass variance: E[x^2] - mean^2 (one reduction pass saved).
    mean = jnp.mean(v1, axis=1, keepdims=True)                       # (8,1)
    var = jnp.mean(v1 * v1, axis=1, keepdims=True) - mean * mean     # (8,1)
    inv = jax.lax.rsqrt(var + EPS)

    # Fold v1 + v2 + (v1 + v2) == 2*(v1 + v2) into a single FMA-like pass.
    g = gamma_ref[...] * inv                                         # (8,1)
    a = 2.0 * (1.0 + g)                                              # (8,1)
    c = 2.0 * (beta_ref[...] - g * mean)                             # (8,1)
    out_ref[...] = a * v1 + c                                        # (8,512)


def model_forward(x_nchw, w_torch, b, gamma, beta):
    # --- wrapper-side layout prep (plain XLA, outside the kernel) ---
    x_nhwc = jnp.transpose(x_nchw, (0, 2, 3, 1))                     # (N,H,W,CIN)
    xp = jnp.pad(x_nhwc, ((0, 0), (1, 1), (1, 1), (0, 0)))
    # im2col: (N,H,W,K*K,CIN) -> (P, KC), tap-major then cin (row-major order)
    patches = jnp.stack(
        [xp[:, kh:kh + H, kw:kw + W, :] for kh in range(K) for kw in range(K)],
        axis=3,
    ).reshape(P, KC)
    pt = patches.T                                                   # (KC, P)

    # torch conv weight (COUT,CIN,K,K) -> (K,K,CIN,COUT) -> (KC,COUT) -> (COUT,KC)
    wt = jnp.transpose(w_torch, (2, 3, 1, 0)).reshape(KC, COUT).T    # (8, 27)

    out_cp = pl.pallas_call(
        conv_bn_kernel,
        out_shape=jax.ShapeDtypeStruct((COUT, P), jnp.float32),
        grid=(1,),
        in_specs=[
            pl.BlockSpec((KC, P), lambda i: (0, 0)),
            pl.BlockSpec((COUT, KC), lambda i: (0, 0)),
            pl.BlockSpec((COUT, 1), lambda i: (0, 0)),
            pl.BlockSpec((COUT, 1), lambda i: (0, 0)),
            pl.BlockSpec((COUT, 1), lambda i: (0, 0)),
        ],
        out_specs=pl.BlockSpec((COUT, P), lambda i: (0, 0)),
        cost_estimate=pl.CostEstimate(
            flops=2 * COUT * KC * P + 8 * COUT * P,
            transcendentals=COUT,
            bytes_accessed=4 * (KC * P + COUT * KC + 3 * COUT + COUT * P),
        ),
    )(pt, wt, b.reshape(COUT, 1), gamma.reshape(COUT, 1), beta.reshape(COUT, 1))

    # (COUT, N*H*W) -> (N, COUT, H, W)
    out = out_cp.reshape(COUT, N, H, W)
    return jnp.transpose(out, (1, 0, 2, 3))


def reference_forward(x_nchw, w_torch, b, gamma, beta):
    """Pure-JAX reference (NCHW) for correctness check."""
    v1 = jax.lax.conv_general_dilated(
        x_nchw, w_torch, window_strides=(1, 1), padding=((1, 1), (1, 1)),
        dimension_numbers=("NCHW", "OIHW", "NCHW"),
    ) + b.reshape(1, COUT, 1, 1)
    mean = jnp.mean(v1, axis=(0, 2, 3), keepdims=True)
    var = jnp.mean((v1 - mean) ** 2, axis=(0, 2, 3), keepdims=True)
    v2 = (v1 - mean) * jax.lax.rsqrt(var + EPS) * gamma.reshape(1, COUT, 1, 1) \
        + beta.reshape(1, COUT, 1, 1)
    return 2.0 * (v1 + v2)


if __name__ == "__main__":
    key = jax.random.PRNGKey(0)
    kx, kw, kb = jax.random.split(key, 3)
    x = jax.random.normal(kx, (N, CIN, H, W), dtype=jnp.float32)
    # Deterministic parameter init (shapes from the module __init__).
    w = jax.random.normal(kw, (COUT, CIN, K, K), dtype=jnp.float32) * 0.1
    bias = jax.random.normal(kb, (COUT,), dtype=jnp.float32) * 0.1
    gamma = jnp.ones((COUT,), dtype=jnp.float32)   # BN default init
    beta = jnp.zeros((COUT,), dtype=jnp.float32)
    # TODO(synk): BatchNorm running_mean/running_var state updates are not
    # modeled (they do not affect the training-mode forward output).

    out = model_forward(x, w, bias, gamma, beta)
    jax.block_until_ready(out)

    ref = reference_forward(x, w, bias, gamma, beta)
    assert out.shape == (N, COUT, H, W)
    assert jnp.allclose(out, ref, atol=1e-4, rtol=1e-4)

    print("KERNEL_OK")
</pallas_src>

<mosaic_0001>
module attributes {stable_mosaic.version = 11 : i64} {
  func.func @conv_bn_kernel(%arg0: i32, %arg1: memref<27x512xf32, #tpu.memory_space<vmem>>, %arg2: memref<8x27xf32, #tpu.memory_space<vmem>>, %arg3: memref<8x1xf32, #tpu.memory_space<vmem>>, %arg4: memref<8x1xf32, #tpu.memory_space<vmem>>, %arg5: memref<8x1xf32, #tpu.memory_space<vmem>>, %arg6: memref<8x512xf32, #tpu.memory_space<vmem>>) attributes {dimension_semantics = [#tpu.dimension_semantics<arbitrary>], iteration_bounds = array<i64: 1>, scalar_prefetch = 0 : i64, scratch_operands = 0 : i64, tpu.core_type = #tpu.core_type<tc>, window_params = [{pipeline_mode = #tpu.pipeline_mode<synchronous>, transform_indices = @transform_0, window_bounds = array<i64: 27, 512>}, {pipeline_mode = #tpu.pipeline_mode<synchronous>, transform_indices = @transform_1, window_bounds = array<i64: 8, 27>}, {pipeline_mode = #tpu.pipeline_mode<synchronous>, transform_indices = @transform_2, window_bounds = array<i64: 8, 1>}, {pipeline_mode = #tpu.pipeline_mode<synchronous>, transform_indices = @transform_3, window_bounds = array<i64: 8, 1>}, {pipeline_mode = #tpu.pipeline_mode<synchronous>, transform_indices = @transform_4, window_bounds = array<i64: 8, 1>}, {pipeline_mode = #tpu.pipeline_mode<synchronous>, transform_indices = @transform_5, window_bounds = array<i64: 8, 512>}]} {
    %c0 = arith.constant 0 : index
    %c0_0 = arith.constant 0 : index
    %0 = vector.load %arg2[%c0, %c0_0] : memref<8x27xf32, #tpu.memory_space<vmem>>, vector<8x27xf32>
    %c0_1 = arith.constant 0 : index
    %c0_2 = arith.constant 0 : index
    %1 = vector.load %arg1[%c0_1, %c0_2] : memref<27x512xf32, #tpu.memory_space<vmem>>, vector<27x512xf32>
    %cst = arith.constant dense<0.000000e+00> : vector<8x512xf32>
    %2 = tpu.matmul %0, %1, %cst {dimension_numbers = #tpu.dot_dimension_numbers<[1], [0], [0], [1], [0, 0, 1, 1], [], []>} : vector<8x27xf32>, vector<27x512xf32>, vector<8x512xf32> -> vector<8x512xf32>
    %c0_3 = arith.constant 0 : index
    %c0_4 = arith.constant 0 : index
    %3 = vector.load %arg3[%c0_3, %c0_4] : memref<8x1xf32, #tpu.memory_space<vmem>>, vector<8x1xf32>
    %4 = vector.broadcast %3 : vector<8x1xf32> to vector<8x512xf32>
    %5 = arith.addf %2, %4 : vector<8x512xf32>
    %cst_5 = arith.constant dense<0.000000e+00> : vector<8xf32>
    %6 = vector.multi_reduction <add>, %5, %cst_5 [1] : vector<8x512xf32> to vector<8xf32>
    %7 = vector.shape_cast %6 : vector<8xf32> to vector<8x1xf32>
    %cst_6 = arith.constant 5.120000e+02 : f32
    %8 = vector.broadcast %cst_6 : f32 to vector<8x1xf32>
    %9 = arith.divf %7, %8 : vector<8x1xf32>
    %10 = arith.mulf %5, %5 : vector<8x512xf32>
    %cst_7 = arith.constant dense<0.000000e+00> : vector<8xf32>
    %11 = vector.multi_reduction <add>, %10, %cst_7 [1] : vector<8x512xf32> to vector<8xf32>
    %12 = vector.shape_cast %11 : vector<8xf32> to vector<8x1xf32>
    %cst_8 = arith.constant 5.120000e+02 : f32
    %13 = vector.broadcast %cst_8 : f32 to vector<8x1xf32>
    %14 = arith.divf %12, %13 : vector<8x1xf32>
    %15 = arith.mulf %9, %9 : vector<8x1xf32>
    %16 = arith.subf %14, %15 : vector<8x1xf32>
    %cst_9 = arith.constant 9.99999974E-6 : f32
    %17 = vector.broadcast %cst_9 : f32 to vector<8x1xf32>
    %18 = arith.addf %16, %17 : vector<8x1xf32>
    %19 = math.rsqrt %18 : vector<8x1xf32>
    %c0_10 = arith.constant 0 : index
    %c0_11 = arith.constant 0 : index
    %20 = vector.load %arg4[%c0_10, %c0_11] : memref<8x1xf32, #tpu.memory_space<vmem>>, vector<8x1xf32>
    %21 = arith.mulf %20, %19 : vector<8x1xf32>
    %cst_12 = arith.constant 1.000000e+00 : f32
    %22 = vector.broadcast %cst_12 : f32 to vector<8x1xf32>
    %23 = arith.addf %22, %21 : vector<8x1xf32>
    %cst_13 = arith.constant 2.000000e+00 : f32
    %24 = vector.broadcast %cst_13 : f32 to vector<8x1xf32>
    %25 = arith.mulf %24, %23 : vector<8x1xf32>
    %c0_14 = arith.constant 0 : index
    %c0_15 = arith.constant 0 : index
    %26 = vector.load %arg5[%c0_14, %c0_15] : memref<8x1xf32, #tpu.memory_space<vmem>>, vector<8x1xf32>
    %27 = arith.mulf %21, %9 : vector<8x1xf32>
    %28 = arith.subf %26, %27 : vector<8x1xf32>
    %cst_16 = arith.constant 2.000000e+00 : f32
    %29 = vector.broadcast %cst_16 : f32 to vector<8x1xf32>
    %30 = arith.mulf %29, %28 : vector<8x1xf32>
    %31 = vector.broadcast %25 : vector<8x1xf32> to vector<8x512xf32>
    %32 = arith.mulf %31, %5 : vector<8x512xf32>
    %33 = vector.broadcast %30 : vector<8x1xf32> to vector<8x512xf32>
    %34 = arith.addf %32, %33 : vector<8x512xf32>
    %c0_17 = arith.constant 0 : index
    %c0_18 = arith.constant 0 : index
    %35 = vector.load %arg6[%c0_17, %c0_18] : memref<8x512xf32, #tpu.memory_space<vmem>>, vector<8x512xf32>
    tpu.vector_store %arg6[%c0_17, %c0_18], %34 {strides = array<i32>} : memref<8x512xf32, #tpu.memory_space<vmem>>, vector<8x512xf32>,
    return
  }
  func.func @transform_0(%arg0: i32) -> (i32, i32) {
    %c0_i32 = arith.constant 0 : i32
    %c0_i32_0 = arith.constant 0 : i32
    %c0_i32_1 = arith.constant 0 : i32
    return %c0_i32, %c0_i32_0 : i32, i32
  }
  func.func @transform_1(%arg0: i32) -> (i32, i32) {
    %c0_i32 = arith.constant 0 : i32
    %c0_i32_0 = arith.constant 0 : i32
    %c0_i32_1 = arith.constant 0 : i32
    return %c0_i32, %c0_i32_0 : i32, i32
  }
  func.func @transform_2(%arg0: i32) -> (i32, i32) {
    %c0_i32 = arith.constant 0 : i32
    %c0_i32_0 = arith.constant 0 : i32
    %c0_i32_1 = arith.constant 0 : i32
    return %c0_i32, %c0_i32_0 : i32, i32
  }
  func.func @transform_3(%arg0: i32) -> (i32, i32) {
    %c0_i32 = arith.constant 0 : i32
    %c0_i32_0 = arith.constant 0 : i32
    %c0_i32_1 = arith.constant 0 : i32
    return %c0_i32, %c0_i32_0 : i32, i32
  }
  func.func @transform_4(%arg0: i32) -> (i32, i32) {
    %c0_i32 = arith.constant 0 : i32
    %c0_i32_0 = arith.constant 0 : i32
    %c0_i32_1 = arith.constant 0 : i32
    return %c0_i32, %c0_i32_0 : i32, i32
  }
  func.func @transform_5(%arg0: i32) -> (i32, i32) {
    %c0_i32 = arith.constant 0 : i32
    %c0_i32_0 = arith.constant 0 : i32
    %c0_i32_1 = arith.constant 0 : i32
    return %c0_i32, %c0_i32_0 : i32, i32
  }
}

</mosaic_0001>

<bundles_post_ra>
// kernel: tpu_custom_call.1
= control target key start
LH: loop header
LB: loop body
LE: loop exit
PB: predicated region body
PF: predicated region fallthrough
CT: control target
= control target key end

     0   :  { %10 = vsyncpa [#allocation3], 0  ;;  %s453_s0 = inlined_call_operand.hbm [shape: f32[27,512], index: 0, kind: input, shape index: {}]   ;;  %s454_s1 = inlined_call_operand.vmem [shape: f32[8,27], index: 1, kind: input, shape index: {}]   ;;  %s455_s2 = inlined_call_operand.vmem [shape: f32[8,1], index: 2, kind: input, shape index: {}]   ;;  %s456_s3 = inlined_call_operand.vmem [shape: f32[8,1], index: 3, kind: input, shape index: {}]   ;;  %s457_s4 = inlined_call_operand.vmem [shape: f32[8,1], index: 4, kind: input, shape index: {}]   ;;  %s458_s5 = inlined_call_operand.hbm [shape: f32[8,512], index: 5, kind: output, shape index: {}]  }
   0x1   :  { %11 = vsyncpa [#allocation4], 0  ;;  %s368_s18 = smov [#allocation2]   ;;  %s320_s22 = scalar_lea.hbm %s453_s0, 2048 }
   0x2   :  { %s17_s19 = sshll.u32 %s368_s18, 4  ;;  %p321_p0 = scmp.ne.s32.totalorder %s453_s0, %s320_s22  ;;  %s18_s19 = int_to_ptr.vmem [resolvable:$true] %s17_s19 }
   0x3   :  { %p324_p1 = scmp.lt.u32.totalorder %s320_s22, %s453_s0 }
   0x5   :  { %p326_p2 = pnand %p324_p1, %p321_p0 }
   0x7   :  { %329 = shalt.err (!%p326_p2)
}
   0x8   :  { %s330_s27 = scalar_lea.vmem %s18_s19, 2048  ;;  %p335_p4 = scmp.lt.s32.totalorder %s18_s19, %s18_s19 }
   0x9   :  { %p331_p3 = scmp.ne.s32.totalorder %s18_s19, %s330_s27  ;;  %p336_p5 = scmp.lt.s32.totalorder %s330_s27, %s330_s27 }
   0xb   :  { %p337_p6 = por %p336_p5, %p335_p4 }
   0xd   :  { %p338_p7 = pnand %p337_p6, %p331_p3 }
   0xf   :  { %341 = shalt.err (!%p338_p7)
}
  0x10   :  { %s369_s28 = smov 512   ;;  %s370_s29 = smov 32  }
  0x11   :  { %23 = dma.hbm_to_vmem [thread:$0]  %s453_s0, 2048, %s18_s19, [#allocation3], %s369_s28, %s369_s28, %s370_s29  }
  0x12   :  { %364 = dma.done.wait [#allocation3], 2048  }
  0x13   :  { %365 = vsyncadd [#allocation3], 4294965248  ;;  %v371_v0 = vmov 0.0   ;;  %v372_v1 = vmov 0   ;;  %vm62_vm0 = vcmask 1042432   ;;  %vm373_vm1 = vmmov 1  }
  0x14   :  { %139 = vmatprep.mubr.f32.mxu0 %v371_v0  ;;  %210 = vmatprep.mubr.f32.mxu1 %v371_v0  ;;  %vm417_vm2 = vmpackc.low %vm62_vm0, %vm373_vm1  ;;  %v37_v3 = vld [vmem:[#allocation2 + $0x8] sm:$0xff]  ;;  %v39_v5 = vld [vmem:[#allocation2 + $0x18] sm:$0xff]  ;;  %vm58_vm3 = vcmask 220160   ;;  %s374_s12 = smov [#allocation5]  }
  0x15   :  { %316 = vset.pattern.permute.xlu0 %v372_v1  ;;  %317 = vset.pattern.permute.xlu1 %v372_v1  ;;  %v41_v4 = vld [vmem:[#allocation2 + $0x28] sm:$0xff]  ;;  %v43_v7 = vld [vmem:[#allocation2 + $0x38] sm:$0xff]  ;;  %v36_v8 = vld [vmem:[#allocation2] sm:$0xff]  ;;  %s274_s13 = sshll.u32 %s374_s12, 4  ;;  %s275_s13 = int_to_ptr.vmem [resolvable:$true] %s274_s13 }
  0x16   :  { %v289_v6 = vpack.c.bf16 %v41_v4, %v37_v3  ;;  %v40_v9 = vld [vmem:[#allocation2 + $0x20] sm:$0xff]  ;;  %v299_v10 = vpack.c.bf16 %v43_v7, %v39_v5  ;;  %v38_v12 = vld [vmem:[#allocation2 + $0x10] sm:$0xff]  ;;  %v45_v14 = vld [vmem:[#allocation2 + $0x48] sm:$0xff]  ;;  %p347_p9 = scmp.lt.s32.totalorder %s275_s13, %s275_s13 }
  0x17   :  { %v291_v11 = vpack.c.bf16 %v40_v9, %v36_v8  ;;  %v42_v13 = vld [vmem:[#allocation2 + $0x30] sm:$0xff]  ;;  %v49_v16 = vld [vmem:[#allocation2 + $0x68] sm:$0x7]  ;;  %v47_v17 = vld [vmem:[#allocation2 + $0x58] sm:$0xff] }
  0x18   :  { %290 = vmatprep.subr.bf16.mxu0 %v289_v6  ;;  %v301_v15 = vpack.c.bf16 %v42_v13, %v38_v12  ;;  %v51_v18 = vld [vmem:[#allocation2 + $0x78] sm:$0x7]  ;;  %300 = vmatprep.subr.bf16.mxu1 %v299_v10  ;;  %v293_v19 = vpack.c.bf16 %v49_v16, %v45_v14  ;;  %v44_v21 = vld [vmem:[#allocation2 + $0x40] sm:$0xff]  ;;  %v46_v23 = vld [vmem:[#allocation2 + $0x50] sm:$0xff] }
  0x19   :  { %292 = vmatpush1.bf16.msra.mxu0 %v291_v11  ;;  %v303_v20 = vpack.c.bf16 %v51_v18, %v47_v17  ;;  %v48_v22 = vld [vmem:[#allocation2 + $0x60] sm:$0x7]  ;;  %v50_v25 = vld [vmem:[#allocation2 + $0x70] sm:$0x7] }
  0x1a   :  { %302 = vmatpush1.bf16.msra.mxu1 %v301_v15  ;;  %v296_v24 = vpack.c.bf16 %v48_v22, %v44_v21  ;;  %v52_v26 = vld [vmem:[%s455_s2] sm:$0xff]  ;;  %295 = vmatprep.subr.msk.bf16.mxu0 %vm417_vm2, %v293_v19  ;;  %v306_v27 = vpack.c.bf16 %v50_v25, %v46_v23 }
  0x1b   :  { %305 = vmatprep.subr.msk.bf16.mxu1 %vm417_vm2, %v303_v20  ;;  %55 = vperm.xlu0 %316, %v52_v26   ;;  %v35_v28 = vld [vmem:[%s454_s1] sm:$0xff] }
  0x1c   :  { %v238_v55 = vld [vmem:[%s456_s3] sm:$0xff]  ;;  %s342_s3 = scalar_lea.vmem %s275_s13, 512 }
  0x1d   :  { %298 = vmatpush1.bf16.msk.msra.mxu0 %vm417_vm2, %v296_v24  ;;  %v242_v58 = vld [vmem:[%s457_s4] sm:$0xff]  ;;  %p343_p8 = scmp.ne.s32.totalorder %s275_s13, %s342_s3  ;;  %p348_p10 = scmp.lt.s32.totalorder %s342_s3, %s342_s3 }
  0x1e   :  { %308 = vmatpush1.bf16.msk.msra.mxu1 %vm417_vm2, %v306_v27 }
  0x1f   :  { %p349_p11 = por %p348_p10, %p347_p9 }
  0x20   :  { %285 = vmatmul.mubr.msk.f32.vlgmr.msra.gmra.mrb[0].mxu0 %vm58_vm3, %v35_v28 }
  0x21   :  { %288 = vmatmul.mubr.msk.f32.vlgmr.msra.gmra.mrb[0].mxu1 %vm58_vm3, %v35_v28  ;;  %p350_p12 = pnand %p349_p11, %p343_p8 }
  0x9a   :  { %v56_v29 = vpop.permute.xlu0 %55 }
  0xf3   :  { %v141_v30 = vpop.f32.mrb[0].mxu0 }
  0xf4   :  { %v142_v31 = vadd.f32 %v141_v30, %v56_v29  ;;  %v212_v32 = vpop.f32.mrb[0].mxu1  ;;  %v143_v33 = vpop.f32.mrb[1].mxu0 }
  0xf5   :  { %v213_v34 = vadd.f32 %v212_v32, %v56_v29  ;;  %v144_v35 = vadd.f32 %v143_v33, %v56_v29  ;;  %v214_v36 = vpop.f32.mrb[1].mxu1 }
  0xf6   :  { %v224_v37 = vmul.f32 %v142_v31, %v142_v31  ;;  %v215_v40 = vadd.f32 %v214_v36, %v56_v29 }
  0xf7   :  { %v217_v38 = vadd.f32 %v144_v35, %v142_v31  ;;  %v225_v39 = vmul.f32 %v144_v35, %v144_v35  ;;  %v226_v42 = vmul.f32 %v213_v34, %v213_v34 }
  0xf8   :  { %v227_v45 = vmul.f32 %v215_v40, %v215_v40 }
  0xf9   :  { %v218_v41 = vadd.f32 %v217_v38, %v213_v34  ;;  %v228_v43 = vadd.f32 %v225_v39, %v224_v37 }
  0xfb   :  { %v219_v44 = vadd.f32 %v218_v41, %v215_v40  ;;  %v229_v46 = vadd.f32 %v228_v43, %v226_v42 }
  0xfd   :  { %220 = vadd.xlane.f32.xlu0 %v219_v44  ;;  %v230_v47 = vadd.f32 %v229_v46, %v227_v45 }
  0xff   :  { %231 = vadd.xlane.f32.xlu1 %v230_v47 }
 0x18a   :  { %v221_v48 = vpop.xlane.xlu0 %220 }
 0x18b   :  { %v223_v49 = vmul.f32 0.001953125, %v221_v48 }
 0x18c   :  { %v232_v50 = vpop.xlane.xlu1 %231 }
 0x18d   :  { %v234_v51 = vmul.f32 %v223_v49, %v223_v49  ;;  %v233_v52 = vmul.f32 0.001953125, %v232_v50 }
 0x18f   :  { %v235_v53 = vsub.f32 %v233_v52, %v234_v51 }
 0x191   :  { %v236_v54 = vadd.f32 1e-05, %v235_v53 }
 0x193   :  { %318 = vrsqrt.f32 %v236_v54 }
 0x19d   :  { %v319_v56 = vpop.eup %318 }
 0x19e   :  { %v239_v57 = vmul.f32 %v319_v56, %v238_v55 }
 0x1a0   :  { %v240_v59 = vadd.f32 1.0, %v239_v57  ;;  %v243_v60 = vmul.f32 %v239_v57, %v223_v49 }
 0x1a2   :  { %v241_v61 = vmul.f32 2.0, %v240_v59  ;;  %v244_v62 = vsub.f32 %v242_v58, %v243_v60 }
 0x1a4   :  { %248 = vperm.xlu1 %317, %v241_v61   ;;  %v245_v63 = vmul.f32 2.0, %v244_v62 }
 0x1a8   :  { %257 = vperm.xlu1 %317, %v245_v63  }
 0x223   :  { %v249_v0 = vpop.permute.xlu1 %248 }
 0x224   :  { %v251_v1 = vmul.f32 %v249_v0, %v142_v31  ;;  %v252_v2 = vmul.f32 %v249_v0, %v144_v35  ;;  %v253_v3 = vmul.f32 %v249_v0, %v213_v34  ;;  %v254_v4 = vmul.f32 %v249_v0, %v215_v40 }
 0x227   :  { %v258_v5 = vpop.permute.xlu1 %257 }
 0x228   :  { %v260_v6 = vadd.f32 %v258_v5, %v251_v1  ;;  %v261_v7 = vadd.f32 %v258_v5, %v252_v2  ;;  %v262_v8 = vadd.f32 %v258_v5, %v253_v3  ;;  %v263_v9 = vadd.f32 %v258_v5, %v254_v4 }
 0x22a   :  { %264 = vst [vmem:[#allocation5] sm:$0xff] %v260_v6  ;;  %265 = vst [vmem:[#allocation5 + $0x8] sm:$0xff] %v261_v7 }
 0x22b   :  { %266 = vst [vmem:[#allocation5 + $0x10] sm:$0xff] %v262_v8  ;;  %267 = vst [vmem:[#allocation5 + $0x18] sm:$0xff] %v263_v9 }
 0x22c   :  { %353 = shalt.err (!%p350_p12)
}
 0x22d   :  { %s354_s15 = scalar_lea.hbm %s458_s5, 512 }
 0x22e   :  { %p355_p13 = scmp.ne.s32.totalorder %s458_s5, %s354_s15  ;;  %p358_p0 = scmp.lt.u32.totalorder %s354_s15, %s458_s5 }
 0x230   :  { %p360_p1 = pnand %p358_p0, %p355_p13 }
 0x232   :  { %363 = shalt.err (!%p360_p1)
}
 0x233   :  { %277 = dma.vmem_to_hbm [thread:$0]  %s275_s13, 512, %s458_s5, [#allocation4]  }
 0x234   :  { %366 = dma.done.wait [#allocation4], 512  }
 0x235   :  { %367 = vsyncadd [#allocation4], 4294966784 }
 0x236   :  { %281 = vsyncpa [#allocation3], 1 }
 0x237   :  { %282 = vsyncpa [#allocation4], 1 }

</bundles_post_ra>
